<compile_context>
chip_gen: v6e
topology: v6e:2x2x1
jax: 0.10.0
libtpu: 0.0.40
codegen_flags: <defaults>
</compile_context>

<pallas_src>
import jax
import jax.numpy as jnp
from jax.experimental import pallas as pl
from jax.experimental.pallas import tpu as pltpu

DOWNSAMPLE_FACTOR = 8
LANE = 128
TM_MAX = 8192            # lane-axis tile (multiple of 128); 12.6 MiB dbl-buffered cols
VMEM_LIMIT = 32 << 20    # explicit so v5e's 16 MiB scoped default doesn't bite
MIN_GRID_STEPS = 4       # feed 2 TCs (v7x) with >=2 pipelined steps each


def _cdiv(a, b):
    return -(-a // b)


def _round_up(a, b):
    return _cdiv(a, b) * b


def _m_tiling(M, N):
    """Balanced tiling of the flattened pixel axis M.

    Pick the smallest tile count compatible with TM <= TM_MAX, then (if the
    batch alone doesn't provide them) enough tiles for MIN_GRID_STEPS total
    grid steps, and balance TM across tiles (128-aligned) to minimize padding.
    """
    tiles = _cdiv(M, TM_MAX)
    want_m_tiles = _cdiv(MIN_GRID_STEPS, max(N, 1))
    tiles = max(tiles, min(want_m_tiles, _cdiv(M, LANE)))
    tm = _round_up(_cdiv(M, tiles), LANE)
    return tm, tiles * tm


def _conv_matmul_kernel(cols_ref, w_ref, b_ref, o_ref):
    # cols_ref: (1, K, TM)  w_ref: (Cout, K)  b_ref: (Cout, 1)  o_ref: (1, Cout, TM)
    acc = jnp.dot(
        w_ref[...], cols_ref[0],
        preferred_element_type=jnp.float32,
        precision=jax.lax.Precision.HIGHEST,      # f32-faithful; MXU slack is huge
    )                                             # (Cout, TM), lane-dense
    o_ref[0] = (acc + b_ref[...]).astype(o_ref.dtype)


def cnn_downsampling(x_nchw, weight_oihw, bias, *,
                     use_bf16_stream=False, assume_identity_weights=False):
    """Strided conv = transposed im2col (layout glue) + lane-dense Pallas matmul.

    x_nchw:      (N, Cin, H, W) float32
    weight_oihw: (Cout, Cin, k, k) float32   (PyTorch Conv2d layout)
    bias:        (Cout,) float32
    returns:     (N, Cout, OH, OW) float32
    """
    k = DOWNSAMPLE_FACTOR
    pad = max(0, k // 2 - 1)  # 3
    N, Cin, H, W = x_nchw.shape
    Cout = weight_oihw.shape[0]
    OH = (H + 2 * pad - k) // k + 1
    OW = (W + 2 * pad - k) // k + 1

    if assume_identity_weights:
        # Fast path valid for the module's actual identity-center weights:
        # the conv reduces to picking input pixel (oh*k+1, ow*k+1).
        y = x_nchw[:, :, 1::k, 1::k][:, :, :OH, :OW]
        return y + bias.reshape(1, Cout, 1, 1)

    M = OH * OW
    K = Cin * k * k  # 192
    TM, M_pad = _m_tiling(M, N)

    # ---- layout glue (stays NCHW): pad, crop, transposed im2col -> (N, K, M) ----
    xp = jnp.pad(x_nchw, ((0, 0), (0, 0), (pad, pad), (pad, pad)))
    xp = xp[:, :, : OH * k, : OW * k]            # stride == kernel -> disjoint windows
    cols_t = (
        xp.reshape(N, Cin, OH, k, OW, k)
        .transpose(0, 1, 3, 5, 2, 4)             # (N, Cin, kh, kw, OH, OW)
        .reshape(N, K, M)
    )
    if M_pad != M:
        cols_t = jnp.pad(cols_t, ((0, 0), (0, 0), (0, M_pad - M)))

    # OIHW reshape already matches cols_t's (ci, kh, kw) K-ordering.
    w_t = weight_oihw.reshape(Cout, K)           # (Cout, K)
    b2d = bias.reshape(Cout, 1).astype(jnp.float32)

    if use_bf16_stream:
        # Halves the dominant HBM stream; f32 accumulation keeps K=192 error small.
        cols_t = cols_t.astype(jnp.bfloat16)
        w_t = w_t.astype(jnp.bfloat16)

    in_item = jnp.dtype(cols_t.dtype).itemsize
    out_item = jnp.dtype(x_nchw.dtype).itemsize
    cost = pl.CostEstimate(
        flops=2 * N * Cout * K * M_pad,
        transcendentals=0,
        bytes_accessed=(N * K * M_pad * in_item
                        + N * Cout * M_pad * out_item
                        + Cout * K * in_item + Cout * 4),
    )

    out = pl.pallas_call(
        _conv_matmul_kernel,
        out_shape=jax.ShapeDtypeStruct((N, Cout, M_pad), x_nchw.dtype),
        grid_spec=pltpu.PrefetchScalarGridSpec(
            num_scalar_prefetch=0,
            grid=(N, M_pad // TM),
            in_specs=[
                pl.BlockSpec((1, K, TM), lambda n, m: (n, 0, m)),  # K sublanes, M lanes
                pl.BlockSpec((Cout, K), lambda n, m: (0, 0)),      # tiny weight, reused
                pl.BlockSpec((Cout, 1), lambda n, m: (0, 0)),      # bias column
            ],
            out_specs=pl.BlockSpec((1, Cout, TM), lambda n, m: (n, 0, m)),
        ),
        compiler_params=pltpu.CompilerParams(
            dimension_semantics=("parallel", "parallel"),
            # Let XLA fuse the pad/reshape/transpose producer into the cols DMA.
            allow_input_fusion=[True, False, False],
            vmem_limit_bytes=VMEM_LIMIT,
        ),
        cost_estimate=cost,
    )(cols_t, w_t, b2d)

    # (N, Cout, M_pad) -> crop padded pixels -> NCHW (pure reshape, no transpose).
    return out[:, :, :M].reshape(N, Cout, OH, OW)


def make_params():
    """Deterministic init exactly as in CNNDownsampling.__init__."""
    k = DOWNSAMPLE_FACTOR
    w = jnp.zeros((3, 3, k, k), dtype=jnp.float32)
    for i in range(3):
        w = w.at[i, i, k // 2, k // 2].set(1.0)
    b = jnp.zeros((3,), dtype=jnp.float32)
    return w, b


def _reference(x, k):
    # Identity-center weights + pad=3, stride=8 => pick pixel (oh*8+1, ow*8+1).
    pad = k // 2 - 1
    _, _, H, W = x.shape
    OH = (H + 2 * pad - k) // k + 1
    OW = (W + 2 * pad - k) // k + 1
    return x[:, :, 1::k, 1::k][:, :, :OH, :OW]


if __name__ == "__main__":
    key = jax.random.PRNGKey(0)
    weight, bias = make_params()
    k = DOWNSAMPLE_FACTOR

    # Small check (module requires 3 input channels); exercises the M-padding path.
    N, C, H, W = 2, 3, 16, 16
    x = jax.random.normal(key, (N, C, H, W), dtype=jnp.float32)
    y = jax.block_until_ready(cnn_downsampling(x, weight, bias))
    ref = _reference(x, k)
    assert y.shape == ref.shape, (y.shape, ref.shape)
    assert jnp.allclose(y, ref, atol=1e-5), "mismatch vs reference (small)"

    # Non-square check; exercises balanced multi-tile M grid (m-axis > 1).
    x2 = jax.random.normal(jax.random.PRNGKey(0), (1, 3, 368, 376), dtype=jnp.float32)
    y2 = jax.block_until_ready(cnn_downsampling(x2, weight, bias))
    ref2 = _reference(x2, k)
    assert y2.shape == ref2.shape, (y2.shape, ref2.shape)
    assert jnp.allclose(y2, ref2, atol=1e-5), "mismatch vs reference (tiled)"

    # Identity-weight fast path (the module's actual weights) agrees as well.
    y3 = jax.block_until_ready(
        cnn_downsampling(x2, weight, bias, assume_identity_weights=True))
    assert jnp.allclose(y3, ref2, atol=1e-6), "mismatch vs reference (fast path)"

    print("KERNEL_OK")
</pallas_src>

<mosaic_0001>
module attributes {stable_mosaic.version = 11 : i64} {
  func.func @_conv_matmul_kernel(%arg0: i32, %arg1: i32, %arg2: memref<1x192x128xf32, #tpu.memory_space<vmem>>, %arg3: memref<3x192xf32, #tpu.memory_space<vmem>>, %arg4: memref<3x1xf32, #tpu.memory_space<vmem>>, %arg5: memref<1x3x128xf32, #tpu.memory_space<vmem>>) attributes {dimension_semantics = [#tpu.dimension_semantics<parallel>, #tpu.dimension_semantics<parallel>], iteration_bounds = array<i64: 2, 1>, scalar_prefetch = 0 : i64, scratch_operands = 0 : i64, tpu.core_type = #tpu.core_type<tc>, window_params = [{transform_indices = @transform_0, window_bounds = array<i64: 1, 192, 128>}, {pipeline_mode = #tpu.pipeline_mode<synchronous>, transform_indices = @transform_1, window_bounds = array<i64: 3, 192>}, {pipeline_mode = #tpu.pipeline_mode<synchronous>, transform_indices = @transform_2, window_bounds = array<i64: 3, 1>}, {transform_indices = @transform_3, window_bounds = array<i64: 1, 3, 128>}]} {
    %c0 = arith.constant 0 : index
    %c0_0 = arith.constant 0 : index
    %0 = vector.load %arg3[%c0, %c0_0] : memref<3x192xf32, #tpu.memory_space<vmem>>, vector<3x192xf32>
    %c0_1 = arith.constant 0 : index
    %c0_2 = arith.constant 0 : index
    %c0_3 = arith.constant 0 : index
    %1 = vector.load %arg2[%c0_1, %c0_2, %c0_3] : memref<1x192x128xf32, #tpu.memory_space<vmem>>, vector<1x192x128xf32>
    %2 = vector.shape_cast %1 : vector<1x192x128xf32> to vector<192x128xf32>
    %cst = arith.constant dense<0.000000e+00> : vector<3x128xf32>
    %3 = tpu.matmul %0, %2, %cst {dimension_numbers = #tpu.dot_dimension_numbers<[1], [0], [0], [1], [0, 0, 1, 1], [], []>, precision = #tpu.contract_precision<fp32>} : vector<3x192xf32>, vector<192x128xf32>, vector<3x128xf32> -> vector<3x128xf32>
    %c0_4 = arith.constant 0 : index
    %c0_5 = arith.constant 0 : index
    %4 = vector.load %arg4[%c0_4, %c0_5] : memref<3x1xf32, #tpu.memory_space<vmem>>, vector<3x1xf32>
    %5 = vector.broadcast %4 : vector<3x1xf32> to vector<3x128xf32>
    %6 = arith.addf %3, %5 : vector<3x128xf32>
    %c0_6 = arith.constant 0 : index
    %c0_7 = arith.constant 0 : index
    %c0_8 = arith.constant 0 : index
    %7 = vector.load %arg5[%c0_6, %c0_7, %c0_8] : memref<1x3x128xf32, #tpu.memory_space<vmem>>, vector<1x3x128xf32>
    %8 = vector.shape_cast %7 : vector<1x3x128xf32> to vector<3x128xf32>
    %9 = vector.shape_cast %6 : vector<3x128xf32> to vector<1x3x128xf32>
    tpu.vector_store %arg5[%c0_6, %c0_7, %c0_8], %9 {strides = array<i32>} : memref<1x3x128xf32, #tpu.memory_space<vmem>>, vector<1x3x128xf32>,
    return
  }
  func.func @transform_0(%arg0: i32, %arg1: i32) -> (i32, i32, i32) {
    %c0_i32 = arith.constant 0 : i32
    %c0_i32_0 = arith.constant 0 : i32
    return %arg0, %c0_i32, %arg1 : i32, i32, i32
  }
  func.func @transform_1(%arg0: i32, %arg1: i32) -> (i32, i32) {
    %c0_i32 = arith.constant 0 : i32
    %c0_i32_0 = arith.constant 0 : i32
    %c0_i32_1 = arith.constant 0 : i32
    return %c0_i32, %c0_i32_0 : i32, i32
  }
  func.func @transform_2(%arg0: i32, %arg1: i32) -> (i32, i32) {
    %c0_i32 = arith.constant 0 : i32
    %c0_i32_0 = arith.constant 0 : i32
    %c0_i32_1 = arith.constant 0 : i32
    return %c0_i32, %c0_i32_0 : i32, i32
  }
  func.func @transform_3(%arg0: i32, %arg1: i32) -> (i32, i32, i32) {
    %c0_i32 = arith.constant 0 : i32
    %c0_i32_0 = arith.constant 0 : i32
    return %arg0, %c0_i32, %arg1 : i32, i32, i32
  }
}

</mosaic_0001>

<bundles_post_ra>
// kernel: tpu_custom_call.1
= control target key start
LH: loop header
LB: loop body
LE: loop exit
PB: predicated region body
PF: predicated region fallthrough
CT: control target
= control target key end

     0   :  { %8 = vsyncpa [#allocation3], 0  ;;  %s2028_s0 = inlined_call_operand.hbm [shape: f32[2,192,128], index: 0, kind: input, shape index: {}]   ;;  %s2029_s1 = inlined_call_operand.hbm [shape: f32[3,192], index: 1, kind: input, shape index: {}]   ;;  %s2030_s2 = inlined_call_operand.vmem [shape: f32[3,1], index: 2, kind: input, shape index: {}]   ;;  %s2031_s3 = inlined_call_operand.vmem [shape: f32[2,3,128], index: 3, kind: output, shape index: {}]  }
   0x1   :  { %10 = vsyncpa [#allocation3 + $0x1], 0 }
   0x2   :  { %11 = vsyncpa [#allocation5], 0  ;;  %s1337_s12 = smov 0   ;;  %s1339_s13 = smov 0  }
   0x3   :  { %s1341_s14 = smov 0   ;;  %s1343_s15 = smov 0  }
   0x4   :  { %s1345_s16 = smov 0   ;;  %s1347_s17 = smov 0  }
   0x5 LB: > { %s1115_s18 = sadd.s32 4294967295, %s1309_s17   ;;  %s38_s19 = sadd.s32 1, %s1297_s14  ;;  %s1309_s17 = sphi %s1347_s17, %s17_s17   ;;  %s1305_s16 = sphi %s1345_s16, %s2101_s16   ;;  %s1301_s15 = sphi %s1343_s15, %s2100_s15   ;;  %s1297_s14 = sphi %s1341_s14, %s2099_s14   ;;  %s1293_s13 = sphi %s1339_s13, %s2098_s13   ;;  %s1289_s12 = sphi %s1337_s12, %s2097_s12  }
   0x6   : > { %p45_p0 = scmp.ne.s32.totalorder %s1297_s14, %s1293_s13  ;;  %p46_p1 = scmp.eq.s32.totalorder %s1309_s17, 0 }
   0x7   : > { %p51_p2 = scmp.ne.s32.totalorder %s1293_s13, %s1289_s12  ;;  %p1371_p3 = scmp.eq.s32.totalorder %s1115_s18, 0 }
   0x8   : > { %p47_p4 = por %p46_p1, %p45_p0  ;;  %p1117_p5 = scmp.ge.s32.totalorder %s1309_s17, 1 }
   0x9   : > { %p1378_p6 = por %p1371_p3, %p51_p2  ;;  %p132_p7 = scmp.lt.s32.totalorder %s1309_s17, 3 }
   0xa   : > { %s1311_s23 = smov [#allocation4]   ;;  %p1144_p10 = scmp.lt.s32.totalorder %s1309_s17, 2 }
   0xb   : > { %s2058_s21 = scalar_select %p1378_p6, 1, 0 }
   0xc   : > { %p1383_p8 = pnand %p1117_p5, %p132_p7  ;;  %s145_s24 = sshll.u32 %s1311_s23, 4  ;;  %s146_s24 = int_to_ptr.vmem [resolvable:$true] %s145_s24 }
   0xd   : > { %s159_s25 = sand.u32 1, %s1297_s14   ;;  %p1393_p12 = pnand %p1144_p10, %p47_p4 }
   0xe   : > { %s2059_s22 = scalar_select %p1383_p8, 1, 0 }
   0xf   : > { %p1135_p9 = pneg %p1383_p8  ;;  %s1212_s27 = scalar_lea.vmem %s146_s24, 128 }
  0x10   : > { %p1213_p0 = scmp.ne.s32.totalorder %s146_s24, %s1212_s27  ;;  %p1220_p5 = scmp.lt.s32.totalorder %s146_s24, %s146_s24 }
  0x11   : > { %p1136_p11 = pnand %p1135_p9, %p1371_p3  ;;  %p1221_p7 = scmp.lt.s32.totalorder %s1212_s27, %s1212_s27 }
  0x13   : > { %p1203_p13 = pneg %p1136_p11  ;;  %p1222_p6 = por %p1221_p7, %p1220_p5 }
  0x15   : > { %p1215_p1 = pnand %p1213_p0, %p1203_p13 }
  0x17   : > { %p1216_p2 = pneg %p1215_p1 }
  0x19   : > { %p1223_p8 = pnand %p1222_p6, %p1216_p2 }
  0x1b   : > { %1226 = shalt.err (!%p1223_p8)
}
  0x1c   : > { %1138 = dma.hbm_to_vmem [thread:$0]  (!%p1136_p11), %s2029_s1, 128, %s146_s24, [#allocation5]  }
  0x1d   : > { %s29_s30 = sadd.s32 1, %s1305_s16  ;;  %s1126_s4 = smul.u32 192, %s159_s25 }
  0x1e   : > { %p31_p4 = scmp.ge.s32.totalorder %s29_s30, 2  ;;  %s1127_s5 = smul.u32 3072, %s1305_s16 }
  0x1f   : > { %s163_s9 = scalar_lea.vmem [#allocation2], %s1126_s4  ;;  %s160_s18 = scalar_lea.sflag [#allocation3], %s159_s25 }
  0x20   : > { %s2103_s30 = smov (%p31_p4, %s29_s30), 0  ;;  %s170_s8 = scalar_lea.hbm %s2028_s0, %s1127_s5 }
  0x21   : > { %s171_s10 = sshll.u32 %s163_s9, 4  ;;  %s33_s11 = ssub.s32 %s1305_s16, %s2103_s30  ;;  %s172_s10 = int_to_ptr.vmem [resolvable:$true] %s171_s10 }
  0x22   : > { %p1409_p6 = scmp.eq.s32.totalorder %s33_s11, 0  ;;  %p1229_p8 = pneg %p1393_p12 }
  0x23   : > { %s1240_s23 = scalar_lea.vmem %s172_s10, 3072  ;;  %s1312_s24 = smov [#allocation2]  }
  0x24   : > { %p1241_p9 = scmp.ne.s32.totalorder %s172_s10, %s1240_s23  ;;  %s1245_s27 = sshll.u32 %s1312_s24, 4  ;;  %s1246_s27 = int_to_ptr.vmem [resolvable:$false] %s1245_s27 }
  0x25   : > { %s1247_s28 = scalar_lea.vmem %s1246_s27, 6144  ;;  %p1248_p13 = scmp.lt.s32.totalorder %s172_s10, %s1246_s27 }
  0x26   : > { %p1243_p10 = pnand %p1241_p9, %p1229_p8  ;;  %p1249_p0 = scmp.lt.s32.totalorder %s1247_s28, %s1240_s23 }
  0x28   : > { %p1244_p11 = pneg %p1243_p10  ;;  %p1250_p1 = por %p1249_p0, %p1248_p13 }
  0x2a   : > { %p1251_p2 = pnand %p1250_p1, %p1244_p11 }
  0x2c   : > { %1254 = shalt.err (!%p1251_p2)
}
  0x2d   : > { %s1313_s29 = smov 128   ;;  %s1314_s25 = smov 8  }
  0x2e   : > { %1142 = dma.hbm_to_vmem [thread:$0]  (!%p1393_p12), %s170_s8, 3072, %s172_s10, %s160_s18, %s1313_s29, %s1313_s29, %s1314_s25  }
  0x2f   : > { %s1422_s4 = scalar_select %p1409_p6, %s1297_s14, %s38_s19  }
  0x30   : > { %p2062_p5 = scmp.ne.s32.totalorder %s2059_s22, 0 }
  0x32   : > { %183 = sbr.rel (%p2062_p5) target bundleno = 417 (0x1a1), region = 32 }
  0x37   : > { %s185_s5 = sand.u32 1, %s1293_s13   ;;  %p2063_p7 = scmp.ne.s32.totalorder %s2058_s21, 0 }
  0x38   : > { %s1128_s6 = smul.u32 192, %s185_s5  ;;  %s186_s7 = scalar_lea.sflag [#allocation3], %s185_s5 }
  0x3a   : > { %s1427_s9 = scalar_lea.vmem [#allocation2], %s1128_s6 }
  0x3b   : > { %1280 = dma.done.wait (%p2063_p7), %s186_s7, 3072  }
  0x3c   : > { %1282 = vsyncadd (%p2063_p7), %s186_s7, 4294964224 }
  0x3d   : > { %1284 = dma.done.wait (%p1371_p3), [#allocation5], 128  }
  0x3e   : > { %1286 = vsyncadd (%p1371_p3), [#allocation5], 4294967168  ;;  %v1315_v0 = vmov 0.0   ;;  %v241_v1 = vld [vmem:[%s1427_s9 + $0x78] sm:$0xff]  ;;  %v240_v2 = vld [vmem:[%s1427_s9 + $0x70] sm:$0xff]  ;;  %v1316_v10 = vmov 0  }
  0x3f   : > { %261 = vmatprep.subr.mxu0 %v1315_v0  ;;  %365 = vmatprep.subr.mxu1 %v1315_v0  ;;  %v239_v3 = vld [vmem:[%s1427_s9 + $0x68] sm:$0xff]  ;;  %v1442_v4 = vand.u32 4294901760, %v241_v1  ;;  %v1444_v5 = vand.u32 4294901760, %v240_v2  ;;  %v238_v7 = vld [vmem:[%s1427_s9 + $0x60] sm:$0xff]  ;;  %v237_v8 = vld [vmem:[%s1427_s9 + $0x58] sm:$0xff]  ;;  %vm258_vm0 = vcmask 523264  }
  0x40   : > { %v1446_v6 = vand.u32 4294901760, %v239_v3  ;;  %v236_v9 = vld [vmem:[%s1427_s9 + $0x50] sm:$0xff]  ;;  %1199 = vset.pattern.permute.xlu0 %v1316_v10  ;;  %v1451_v11 = vand.u32 4294901760, %v238_v7  ;;  %v1453_v12 = vand.u32 4294901760, %v237_v8  ;;  %v235_v14 = vld [vmem:[%s1427_s9 + $0x48] sm:$0xff]  ;;  %v234_v15 = vld [vmem:[%s1427_s9 + $0x40] sm:$0xff] }
  0x41   : > { %v1455_v13 = vand.u32 4294901760, %v236_v9  ;;  %263 = vmatpush1.msra.mxu0 %v1442_v4  ;;  %v1461_v16 = vsub.f32 %v241_v1, %v1442_v4  ;;  %v1464_v17 = vsub.f32 %v240_v2, %v1444_v5  ;;  %v1466_v18 = vand.u32 4294901760, %v235_v14  ;;  %v233_v20 = vld [vmem:[%s1427_s9 + $0x38] sm:$0xff]  ;;  %v232_v27 = vld [vmem:[%s1427_s9 + $0x30] sm:$0xff]  ;;  %v231_v35 = vld [vmem:[%s1427_s9 + $0x28] sm:$0xff]  ;;  %p218_p3 = scmp.lt.s32.totalorder %s1301_s15, 1 }
  0x42   : > { %v1469_v19 = vsub.f32 %v239_v3, %v1446_v6  ;;  %264 = vmatprep.subr.mxu0 %v1315_v0  ;;  %v1474_v21 = vsub.f32 %v238_v7, %v1451_v11  ;;  %v1477_v22 = vsub.f32 %v237_v8, %v1453_v12  ;;  %v1483_v26 = vand.u32 4294901760, %v234_v15  ;;  %v230_v42 = vld [vmem:[%s1427_s9 + $0x20] sm:$0xff]  ;;  %v229_v49 = vld [vmem:[%s1427_s9 + $0x18] sm:$0xff]  ;;  %v228_v55 = vld [vmem:[%s1427_s9 + $0x10] sm:$0xff] }
  0x43   : > { %266 = vmatpush1.msra.mxu0 %v1444_v5  ;;  %v2050_v23 = vand.u32 4294901760, %v1461_v16  ;;  %v2049_v24 = vand.u32 4294901760, %v1464_v17  ;;  %v1488_v29 = vand.u32 4294901760, %v233_v20  ;;  %v1492_v31 = vsub.f32 %v236_v9, %v1455_v13  ;;  %v250_v43 = vld [vmem:[%s2030_s2] sm:$0x7]  ;;  %v227_v63 = vld [vmem:[%s1427_s9 + $0x8] sm:$0xff] }
  0x44   : > { %v2047_v25 = vand.u32 4294901760, %v1469_v19  ;;  %267 = vmatprep.subr.mxu0 %v1315_v0  ;;  %v2045_v28 = vand.u32 4294901760, %v1474_v21  ;;  %v2044_v30 = vand.u32 4294901760, %v1477_v22  ;;  %v1506_v36 = vsub.f32 %v235_v14, %v1466_v18  ;;  %253 = vperm.xlu0 %1199, %v250_v43   ;;  %v226_v7 = vld [vmem:[%s1427_s9] sm:$0xff]  ;;  %s2105_s15 = smov (!%p218_p3, %s1301_s15), 1 }
  0x45   : > { %269 = vmatpush1.msra.mxu0 %v1446_v6  ;;  %v369_v32 = vsub.f32 %v1461_v16, %v2050_v23  ;;  %v376_v33 = vsub.f32 %v1464_v17, %v2049_v24  ;;  %v1509_v37 = vand.u32 4294901760, %v232_v27  ;;  %v2043_v41 = vand.u32 4294901760, %v1492_v31  ;;  %s1123_s21 = sshll.u32 %s2105_s15, 2 }
  0x46   : > { %v383_v34 = vsub.f32 %v1469_v19, %v2047_v25  ;;  %270 = vmatprep.subr.mxu0 %v1315_v0  ;;  %v390_v40 = vsub.f32 %v1474_v21, %v2045_v28  ;;  %v1521_v44 = vand.u32 4294901760, %v231_v35  ;;  %v1524_v45 = vsub.f32 %v234_v15, %v1483_v26  ;;  %s224_s8 = scalar_lea.vmem %s2031_s3, %s1123_s21 }
  0x47   : > { %272 = vmatpush1.msra.mxu0 %v1451_v11  ;;  %v370_v38 = vand.u32 4294901760, %v369_v32  ;;  %v377_v39 = vand.u32 4294901760, %v376_v33  ;;  %v397_v47 = vsub.f32 %v1477_v22, %v2044_v30  ;;  %v2042_v48 = vand.u32 4294901760, %v1506_v36  ;;  %v249_v32 = vld [vmem:[%s1427_s9 + $0xb8] sm:$0xff] }
  0x48   : > { %273 = vmatprep.subr.mxu0 %v1315_v0  ;;  %v384_v46 = vand.u32 4294901760, %v383_v34  ;;  %v1533_v50 = vsub.f32 %v233_v20, %v1488_v29  ;;  %v1537_v51 = vand.u32 4294901760, %v230_v42  ;;  %v391_v52 = vand.u32 4294901760, %v390_v40  ;;  %v1600_v40 = vld [vmem:[#allocation4] sm:$0x77] }
  0x49   : > { %275 = vmatpush1.msra.mxu0 %v1453_v12  ;;  %371 = vmatpush1.msra.mxu1 %v370_v38  ;;  %v404_v53 = vsub.f32 %v1492_v31, %v2043_v41  ;;  %v2040_v54 = vand.u32 4294901760, %v1524_v45  ;;  %v1546_v56 = vsub.f32 %v232_v27, %v1509_v37  ;;  %v1550_v57 = vand.u32 4294901760, %v229_v49  ;;  %v248_v38 = vld [vmem:[%s1427_s9 + $0xb0] sm:$0xff] }
  0x4a   : > { %276 = vmatprep.subr.mxu0 %v1315_v0  ;;  %372 = vmatprep.subr.mxu1 %v1315_v0  ;;  %v398_v58 = vand.u32 4294901760, %v397_v47  ;;  %v411_v59 = vsub.f32 %v1506_v36, %v2042_v48  ;;  %v2038_v60 = vand.u32 4294901760, %v1533_v50  ;;  %v1558_v61 = vsub.f32 %v231_v35, %v1521_v44  ;;  %v243_v48 = vld [vmem:[%s1427_s9 + $0x88] sm:$0xff] }
  0x4b   : > { %278 = vmatpush1.msra.mxu0 %v1455_v13  ;;  %378 = vmatpush1.msra.mxu1 %v377_v39  ;;  %v1562_v62 = vand.u32 4294901760, %v228_v55  ;;  %v405_v1 = vand.u32 4294901760, %v404_v53  ;;  %v418_v2 = vsub.f32 %v1524_v45, %v2040_v54  ;;  %v2037_v3 = vand.u32 4294901760, %v1546_v56 }
  0x4c   : > { %279 = vmatprep.subr.mxu0 %v1315_v0  ;;  %379 = vmatprep.subr.mxu1 %v1315_v0  ;;  %v1572_v8 = vsub.f32 %v230_v42, %v1537_v51  ;;  %v1577_v9 = vsub.f32 %v229_v49, %v1550_v57  ;;  %v412_v10 = vand.u32 4294901760, %v411_v59  ;;  %v425_v14 = vsub.f32 %v1533_v50, %v2038_v60  ;;  %v247_v49 = vld [vmem:[%s1427_s9 + $0xa8] sm:$0xff] }
  0x4d   : > { %281 = vmatpush1.msra.mxu0 %v1466_v18  ;;  %385 = vmatpush1.msra.mxu1 %v384_v46  ;;  %v1583_v15 = vand.u32 4294901760, %v227_v63  ;;  %v2035_v20 = vand.u32 4294901760, %v1558_v61  ;;  %v1588_v27 = vand.u32 4294901760, %v226_v7  ;;  %v419_v33 = vand.u32 4294901760, %v418_v2 }
  0x4e   : > { %282 = vmatprep.subr.mxu0 %v1315_v0  ;;  %386 = vmatprep.subr.mxu1 %v1315_v0  ;;  %v432_v34 = vsub.f32 %v1546_v56, %v2037_v3  ;;  %v2034_v35 = vand.u32 4294901760, %v1572_v8  ;;  %v1598_v39 = vsub.f32 %v228_v55, %v1562_v62  ;;  %v2036_v42 = vand.u32 4294901760, %v1577_v9 }
  0x4f   : > { %284 = vmatpush1.msra.mxu0 %v1483_v26  ;;  %392 = vmatpush1.msra.mxu1 %v391_v52  ;;  %v426_v43 = vand.u32 4294901760, %v425_v14  ;;  %v439_v46 = vsub.f32 %v1558_v61, %v2035_v20  ;;  %v1609_v47 = vand.u32 4294901760, %v249_v32  ;;  %v1613_v52 = vsub.f32 %v227_v63, %v1583_v15 }
  0x50   : > { %285 = vmatprep.subr.mxu0 %v1315_v0  ;;  %393 = vmatprep.subr.mxu1 %v1315_v0  ;;  %v1617_v53 = vand.u32 4294901760, %v248_v38  ;;  %v257_v55 = vcombine.high %v1600_v40, %v1600_v40  ;;  %v446_v59 = vsub.f32 %v1572_v8, %v2034_v35  ;;  %v2039_v63 = vand.u32 4294901760, %v1598_v39 }
  0x51   : > { %287 = vmatpush1.msra.mxu0 %v1488_v29  ;;  %399 = vmatpush1.msra.mxu1 %v398_v58  ;;  %v433_v58 = vand.u32 4294901760, %v432_v34  ;;  %v1628_v2 = vsub.f32 %v226_v7, %v1588_v27  ;;  %v1635_v14 = vand.u32 4294901760, %v247_v49  ;;  %v2041_v34 = vand.u32 4294901760, %v1613_v52 }
  0x52   : > { %288 = vmatprep.subr.mxu0 %v1315_v0  ;;  %400 = vmatprep.subr.mxu1 %v1315_v0  ;;  %v1640_v7 = vsub.f32 %v249_v32, %v1609_v47  ;;  %v259_v35 = vsel %vm258_vm0, %v257_v55, 0  ;;  %v1654_v55 = vsub.f32 %v248_v38, %v1617_v53  ;;  %v1670_v54 = vand.u32 4294901760, %v1600_v40 }
  0x53   : > { %290 = vmatpush1.msra.mxu0 %v1509_v37  ;;  %406 = vmatpush1.msra.mxu1 %v405_v1  ;;  %v246_v1 = vld [vmem:[%s1427_s9 + $0xa0] sm:$0xff]  ;;  %v2046_v32 = vand.u32 4294901760, %v1628_v2  ;;  %v1658_v60 = vand.u32 4294901760, %v259_v35  ;;  %v1667_v38 = vsub.f32 %v247_v49, %v1635_v14 }
  0x54   : > { %291 = vmatprep.subr.mxu0 %v1315_v0  ;;  %407 = vmatprep.subr.mxu1 %v1315_v0  ;;  %v1645_v20 = vand.u32 4294901760, %v246_v1  ;;  %v2051_v49 = vand.u32 4294901760, %v1654_v55  ;;  %v1700_v25 = vsub.f32 %v1600_v40, %v1670_v54 }
  0x55   : > { %293 = vmatpush1.msra.mxu0 %v1521_v44  ;;  %413 = vmatpush1.msra.mxu1 %v412_v10  ;;  %v453_v10 = vsub.f32 %v1577_v9, %v2036_v42  ;;  %v447_v42 = vand.u32 4294901760, %v446_v59  ;;  %v2048_v59 = vand.u32 4294901760, %v1640_v7  ;;  %v1690_v28 = vsub.f32 %v259_v35, %v1658_v60 }
  0x56   : > { %294 = vmatprep.subr.mxu0 %v1315_v0  ;;  %414 = vmatprep.subr.mxu1 %v1315_v0  ;;  %2064 = vst [vmem:[#allocation8_spill] sm:$0xff] %v1645_v20  ;;  %v1683_v41 = vsub.f32 %v246_v1, %v1645_v20  ;;  %v2052_v1 = vand.u32 4294901760, %v1667_v38  ;;  %v1704_v35 = vand.u32 4294901760, %v243_v48 }
  0x57   : > { %296 = vmatpush1.msra.mxu0 %v1537_v51  ;;  %420 = vmatpush1.msra.mxu1 %v419_v33  ;;  %v440_v33 = vand.u32 4294901760, %v439_v46  ;;  %v245_v46 = vld [vmem:[%s1427_s9 + $0x98] sm:$0xff]  ;;  %v454_v3 = vand.u32 4294901760, %v453_v10 }
  0x58   : > { %297 = vmatprep.subr.mxu0 %v1315_v0  ;;  %421 = vmatprep.subr.mxu1 %v1315_v0  ;;  %v1674_v10 = vand.u32 4294901760, %v245_v46  ;;  %v1731_v23 = vsub.f32 %v243_v48, %v1704_v35 }
  0x59   : > { %299 = vmatpush1.msra.mxu0 %v1550_v57  ;;  %427 = vmatpush1.msra.mxu1 %v426_v43  ;;  %v460_v43 = vsub.f32 %v1598_v39, %v2039_v63  ;;  %v244_v63 = vld [vmem:[%s1427_s9 + $0x90] sm:$0xff] }
  0x5a   : > { %300 = vmatprep.subr.mxu0 %v1315_v0  ;;  %428 = vmatprep.subr.mxu1 %v1315_v0  ;;  %2065 = vst [vmem:[#allocation9_spill] sm:$0xff] %v1674_v10  ;;  %v1687_v30 = vand.u32 4294901760, %v244_v63  ;;  %v538_v40 = vand.u32 4294901760, %v1731_v23 }
  0x5b   : > { %302 = vmatpush1.msra.mxu0 %v1562_v62  ;;  %434 = vmatpush1.msra.mxu1 %v433_v58  ;;  %v467_v58 = vsub.f32 %v1613_v52, %v2041_v34  ;;  %v474_v34 = vsub.f32 %v1628_v2, %v2046_v32  ;;  %v242_v32 = vld [vmem:[%s1427_s9 + $0x80] sm:$0xff] }
  0x5c   : > { %303 = vmatprep.subr.mxu0 %v1315_v0  ;;  %435 = vmatprep.subr.mxu1 %v1315_v0  ;;  %v1716_v24 = vand.u32 4294901760, %v242_v32 }
  0x5d   : > { %305 = vmatpush1.msra.mxu0 %v1583_v15  ;;  %441 = vmatpush1.msra.mxu1 %v440_v33  ;;  %v461_v33 = vand.u32 4294901760, %v460_v43  ;;  %v497_v43 = vsub.f32 %v1640_v7, %v2048_v59  ;;  %v504_v59 = vsub.f32 %v1654_v55, %v2051_v49 }
  0x5e   : > { %306 = vmatprep.subr.mxu0 %v1315_v0  ;;  %442 = vmatprep.subr.mxu1 %v1315_v0  ;;  %v1744_v48 = vsub.f32 %v242_v32, %v1716_v24 }
  0x5f   : > { %308 = vmatpush1.msra.mxu0 %v1588_v27  ;;  %448 = vmatpush1.msra.mxu1 %v447_v42  ;;  %v468_v42 = vand.u32 4294901760, %v467_v58  ;;  %v475_v58 = vand.u32 4294901760, %v474_v34  ;;  %v498_v34 = vand.u32 4294901760, %v497_v43 }
  0x60   : > { %325 = vmatprep.subr.mxu0 %v1315_v0  ;;  %449 = vmatprep.subr.mxu1 %v1315_v0 }
  0x61   : > { %327 = vmatpush2.msra.mxu0 %v1609_v47  ;;  %455 = vmatpush1.msra.mxu1 %v454_v3  ;;  %v1707_v3 = vsub.f32 %v245_v46, %v1674_v10  ;;  %v1720_v46 = vsub.f32 %v244_v63, %v1687_v30  ;;  %v505_v63 = vand.u32 4294901760, %v504_v59 }
  0x62   : > { %328 = vmatprep.subr.mxu0 %v1315_v0  ;;  %456 = vmatprep.subr.mxu1 %v1315_v0 }
  0x63   : > { %330 = vmatpush2.msra.mxu0 %v1617_v53  ;;  %462 = vmatpush1.msra.mxu1 %v461_v33  ;;  %v511_v33 = vsub.f32 %v1667_v38, %v2052_v1  ;;  %v2067_v1 = vand.u32 4294901760, %v1690_v28 }
  0x64   : > { %331 = vmatprep.subr.mxu0 %v1315_v0  ;;  %463 = vmatprep.subr.mxu1 %v1315_v0 }
  0x65   : > { %333 = vmatpush2.msra.mxu0 %v1635_v14  ;;  %469 = vmatpush1.msra.mxu1 %v468_v42  ;;  %v2066_v42 = vand.u32 4294901760, %v1683_v41  ;;  %v352_v49 = vsub.f32 %v1690_v28, %v2067_v1  ;;  %v512_v59 = vand.u32 4294901760, %v511_v33  ;;  %v2070_v33 = vand.u32 4294901760, %v1720_v46 }
  0x66   : > { %334 = vmatprep.subr.mxu0 %v1315_v0  ;;  %470 = vmatprep.subr.mxu1 %v1315_v0 }
  0x67   : > { %336 = vmatpush2.msra.mxu0 %v1645_v20  ;;  %476 = vmatpush1.msra.mxu1 %v475_v58  ;;  %v518_v43 = vsub.f32 %v1683_v41, %v2066_v42  ;;  %v2068_v58 = vand.u32 4294901760, %v1700_v25  ;;  %v2069_v20 = vand.u32 4294901760, %v1707_v3 }
  0x68   : > { %337 = vmatprep.subr.mxu0 %v1315_v0  ;;  %493 = vmatprep.subr.mxu1 %v1315_v0 }
  0x69   : > { %339 = vmatpush2.msra.mxu0 %v1674_v10  ;;  %499 = vmatpush2.msra.mxu1 %v498_v34  ;;  %v358_v42 = vsub.f32 %v1700_v25, %v2068_v58  ;;  %v525_v1 = vsub.f32 %v1707_v3, %v2069_v20  ;;  %v519_v32 = vand.u32 4294901760, %v518_v43  ;;  %v353_v34 = vand.u32 4294901760, %v352_v49 }
  0x6a   : > { %340 = vmatprep.subr.mxu0 %v1315_v0  ;;  %500 = vmatprep.subr.mxu1 %v1315_v0  ;;  %v532_v58 = vsub.f32 %v1720_v46, %v2070_v33  ;;  %v545_v10 = vand.u32 4294901760, %v1744_v48  ;;  %v539_v43 = vsub.f32 %v1731_v23, %v538_v40  ;;  %v2073_v33 = vand.u32 4294901760, %v1461_v16 }
  0x6b   : > { %342 = vmatpush2.msra.mxu0 %v1687_v30  ;;  %506 = vmatpush2.msra.mxu1 %v505_v63  ;;  %v359_v20 = vand.u32 4294901760, %v358_v42  ;;  %v526_v63 = vand.u32 4294901760, %v525_v1 }
  0x6c   : > { %343 = vmatprep.subr.mxu0 %v1315_v0  ;;  %507 = vmatprep.subr.mxu1 %v1315_v0  ;;  %v533_v49 = vand.u32 4294901760, %v532_v58  ;;  %v540_v42 = vand.u32 4294901760, %v539_v43  ;;  %v2074_v58 = vand.u32 4294901760, %v1464_v17 }
  0x6d   : > { %345 = vmatpush2.msra.mxu0 %v1704_v35  ;;  %513 = vmatpush2.msra.mxu1 %v512_v59  ;;  %v546_v59 = vsub.f32 %v1744_v48, %v545_v10 }
  0x6e   : > { %346 = vmatprep.subr.mxu0 %v1315_v0  ;;  %514 = vmatprep.subr.mxu1 %v1315_v0 }
  0x6f   : > { %348 = vmatpush2.msra.mxu0 %v1716_v24  ;;  %520 = vmatpush2.msra.mxu1 %v519_v32  ;;  %v547_v1 = vand.u32 4294901760, %v546_v59  ;;  %v2071_v32 = vld [vmem:[#allocation8_spill] sm:$0xff] }
  0x70   : > { %354 = vmatprep.mubr.f32.mxu0 %v353_v34  ;;  %521 = vmatprep.subr.mxu1 %v1315_v0  ;;  %v2072_v34 = vld [vmem:[#allocation9_spill] sm:$0xff] }
  0x71   : > { %557 = vmatprep.subr.mxu0 %v1315_v0  ;;  %360 = vmatmul.mubr.f32.vlgmr.msra.gmra.mxu0 %v359_v20  ;;  %v2075_v20 = vand.u32 4294901760, %v1469_v19 }
  0x72   : > { %527 = vmatpush2.msra.mxu1 %v526_v63  ;;  %560 = vmatpush1.msra.mxu0 %v1461_v16  ;;  %v2076_v16 = vand.u32 4294901760, %v1690_v28  ;;  %v2078_v63 = vand.u32 4294901760, %v1700_v25 }
  0x73   : > { %528 = vmatprep.subr.mxu1 %v1315_v0  ;;  %561 = vmatprep.subr.mxu0 %v1315_v0 }
  0x74   : > { %534 = vmatpush2.msra.mxu1 %v533_v49  ;;  %564 = vmatpush1.msra.mxu0 %v1464_v17  ;;  %v2077_v17 = vand.u32 4294901760, %v1474_v21 }
  0x75   : > { %535 = vmatprep.subr.mxu1 %v1315_v0  ;;  %565 = vmatprep.subr.mxu0 %v1315_v0 }
  0x76   : > { %541 = vmatpush2.msra.mxu1 %v540_v42  ;;  %568 = vmatpush1.msra.mxu0 %v1469_v19  ;;  %v2079_v19 = vand.u32 4294901760, %v1477_v22 }
  0x77   : > { %542 = vmatprep.subr.mxu1 %v1315_v0  ;;  %569 = vmatprep.subr.mxu0 %v1315_v0 }
  0x78   : > { %548 = vmatpush2.msra.mxu1 %v547_v1  ;;  %550 = vmatprep.mubr.f32.mxu1 %v1658_v60 }
  0x79   : > { %572 = vmatpush1.msra.mxu0 %v1474_v21  ;;  %552 = vmatmul.mubr.f32.vlgmr.msra.gmra.mxu1 %v1670_v54  ;;  %v2081_v21 = vand.u32 4294901760, %v1506_v36 }
  0x7a   : > { %573 = vmatprep.subr.mxu0 %v1315_v0  ;;  %679 = vmatprep.subr.mxu1 %v1315_v0 }
  0x7b   : > { %576 = vmatpush1.msra.mxu0 %v1477_v22  ;;  %681 = vmatpush1.msra.mxu1 %v1442_v4  ;;  %v2089_v22 = vand.u32 4294901760, %v1613_v52 }
  0x7c   : > { %577 = vmatprep.subr.mxu0 %v1315_v0  ;;  %682 = vmatprep.subr.mxu1 %v1315_v0 }
  0x7d   : > { %580 = vmatpush1.msra.mxu0 %v1492_v31  ;;  %684 = vmatpush1.msra.mxu1 %v1444_v5 }
  0x7e   : > { %581 = vmatprep.subr.mxu0 %v1315_v0  ;;  %685 = vmatprep.subr.mxu1 %v1315_v0 }
  0x7f   : > { %584 = vmatpush1.msra.mxu0 %v1506_v36  ;;  %687 = vmatpush1.msra.mxu1 %v1446_v6  ;;  %v2094_v36 = vand.u32 4294901760, %v1683_v41 }
  0x80   : > { %585 = vmatprep.subr.mxu0 %v1315_v0  ;;  %688 = vmatprep.subr.mxu1 %v1315_v0 }
  0x81   : > { %588 = vmatpush1.msra.mxu0 %v1524_v45  ;;  %690 = vmatpush1.msra.mxu1 %v1451_v11 }
  0x82   : > { %589 = vmatprep.subr.mxu0 %v1315_v0  ;;  %691 = vmatprep.subr.mxu1 %v1315_v0 }
  0x83   : > { %592 = vmatpush1.msra.mxu0 %v1533_v50  ;;  %693 = vmatpush1.msra.mxu1 %v1453_v12 }
  0x84   : > { %593 = vmatprep.subr.mxu0 %v1315_v0  ;;  %694 = vmatprep.subr.mxu1 %v1315_v0 }
  0x85   : > { %596 = vmatpush1.msra.mxu0 %v1546_v56  ;;  %696 = vmatpush1.msra.mxu1 %v1455_v13 }
  0x86   : > { %597 = vmatprep.subr.mxu0 %v1315_v0  ;;  %697 = vmatprep.subr.mxu1 %v1315_v0 }
  0x87   : > { %600 = vmatpush1.msra.mxu0 %v1558_v61  ;;  %699 = vmatpush1.msra.mxu1 %v1466_v18 }
  0x88   : > { %601 = vmatprep.subr.mxu0 %v1315_v0  ;;  %700 = vmatprep.subr.mxu1 %v1315_v0 }
  0x89   : > { %604 = vmatpush1.msra.mxu0 %v1572_v8  ;;  %702 = vmatpush1.msra.mxu1 %v1483_v26 }
  0x8a   : > { %605 = vmatprep.subr.mxu0 %v1315_v0  ;;  %703 = vmatprep.subr.mxu1 %v1315_v0 }
  0x8b   : > { %608 = vmatpush1.msra.mxu0 %v1577_v9  ;;  %705 = vmatpush1.msra.mxu1 %v1488_v29 }
  0x8c   : > { %609 = vmatprep.subr.mxu0 %v1315_v0  ;;  %706 = vmatprep.subr.mxu1 %v1315_v0 }
  0x8d   : > { %612 = vmatpush1.msra.mxu0 %v1598_v39  ;;  %708 = vmatpush1.msra.mxu1 %v1509_v37 }
  0x8e   : > { %613 = vmatprep.subr.mxu0 %v1315_v0  ;;  %709 = vmatprep.subr.mxu1 %v1315_v0 }
  0x8f   : > { %616 = vmatpush1.msra.mxu0 %v1613_v52  ;;  %711 = vmatpush1.msra.mxu1 %v1521_v44 }
  0x90   : > { %617 = vmatprep.subr.mxu0 %v1315_v0  ;;  %712 = vmatprep.subr.mxu1 %v1315_v0 }
  0x91   : > { %620 = vmatpush1.msra.mxu0 %v1628_v2  ;;  %714 = vmatpush1.msra.mxu1 %v1537_v51 }
  0x92   : > { %637 = vmatprep.subr.mxu0 %v1315_v0  ;;  %715 = vmatprep.subr.mxu1 %v1315_v0 }
  0x93   : > { %640 = vmatpush2.msra.mxu0 %v1640_v7  ;;  %717 = vmatpush1.msra.mxu1 %v1550_v57 }
  0x94   : > { %641 = vmatprep.subr.mxu0 %v1315_v0  ;;  %718 = vmatprep.subr.mxu1 %v1315_v0 }
  0x95   : > { %644 = vmatpush2.msra.mxu0 %v1654_v55  ;;  %720 = vmatpush1.msra.mxu1 %v1562_v62 }
  0x96   : > { %645 = vmatprep.subr.mxu0 %v1315_v0  ;;  %721 = vmatprep.subr.mxu1 %v1315_v0 }
  0x97   : > { %648 = vmatpush2.msra.mxu0 %v1667_v38  ;;  %723 = vmatpush1.msra.mxu1 %v1583_v15 }
  0x98   : > { %649 = vmatprep.subr.mxu0 %v1315_v0  ;;  %724 = vmatprep.subr.mxu1 %v1315_v0 }
  0x99   : > { %652 = vmatpush2.msra.mxu0 %v1683_v41  ;;  %726 = vmatpush1.msra.mxu1 %v1588_v27 }
  0x9a   : > { %653 = vmatprep.subr.mxu0 %v1315_v0  ;;  %743 = vmatprep.subr.mxu1 %v1315_v0 }
  0x9b   : > { %656 = vmatpush2.msra.mxu0 %v1707_v3  ;;  %745 = vmatpush2.msra.mxu1 %v1609_v47 }
  0x9c   : > { %657 = vmatprep.subr.mxu0 %v1315_v0  ;;  %746 = vmatprep.subr.mxu1 %v1315_v0 }
  0x9d   : > { %660 = vmatpush2.msra.mxu0 %v1720_v46  ;;  %748 = vmatpush2.msra.mxu1 %v1617_v53 }
  0x9e   : > { %661 = vmatprep.subr.mxu0 %v1315_v0  ;;  %749 = vmatprep.subr.mxu1 %v1315_v0 }
  0x9f   : > { %664 = vmatpush2.msra.mxu0 %v1731_v23  ;;  %751 = vmatpush2.msra.mxu1 %v1635_v14 }
  0xa0   : > { %665 = vmatprep.subr.mxu0 %v1315_v0  ;;  %752 = vmatprep.subr.mxu1 %v1315_v0 }
  0xa1   : > { %668 = vmatpush2.msra.mxu0 %v1744_v48  ;;  %671 = vmatprep.mubr.f32.mxu0 %v1690_v28  ;;  %v2080_v28 = vand.u32 4294901760, %v1492_v31  ;;  %v2093_v31 = vand.u32 4294901760, %v1667_v38 }
  0xa2   : > { %754 = vmatpush2.msra.mxu1 %v2071_v32  ;;  %674 = vmatmul.mubr.f32.vlgmr.msra.gmra.mxu0 %v1700_v25  ;;  %v2090_v25 = vand.u32 4294901760, %v1628_v2 }
  0xa3   : > { %755 = vmatprep.subr.mxu1 %v1315_v0  ;;  %779 = vmatprep.subr.mxu0 %v1315_v0 }
  0xa4   : > { %757 = vmatpush2.msra.mxu1 %v2072_v34  ;;  %783 = vmatpush1.msra.mxu0 %v2073_v33 }
  0xa5   : > { %758 = vmatprep.subr.mxu1 %v1315_v0  ;;  %784 = vmatprep.subr.mxu0 %v1315_v0 }
  0xa6   : > { %760 = vmatpush2.msra.mxu1 %v1687_v30  ;;  %788 = vmatpush1.msra.mxu0 %v2074_v58 }
  0xa7   : > { %761 = vmatprep.subr.mxu1 %v1315_v0  ;;  %789 = vmatprep.subr.mxu0 %v1315_v0 }
  0xa8   : > { %763 = vmatpush2.msra.mxu1 %v1704_v35  ;;  %793 = vmatpush1.msra.mxu0 %v2075_v20 }
  0xa9   : > { %764 = vmatprep.subr.mxu1 %v1315_v0  ;;  %794 = vmatprep.subr.mxu0 %v1315_v0 }
  0xaa   : > { %766 = vmatpush2.msra.mxu1 %v1716_v24  ;;  %770 = vmatprep.mubr.f32.mxu1 %v2076_v16 }
  0xab   : > { %798 = vmatpush1.msra.mxu0 %v2077_v17  ;;  %774 = vmatmul.mubr.f32.vlgmr.msra.gmra.mxu1 %v2078_v63 }
  0xac   : > { %799 = vmatprep.subr.mxu0 %v1315_v0  ;;  %923 = vmatprep.subr.mxu1 %v1315_v0 }
  0xad   : > { %803 = vmatpush1.msra.mxu0 %v2079_v19  ;;  %925 = vmatpush1.msra.mxu1 %v1442_v4  ;;  %v2082_v4 = vand.u32 4294901760, %v1524_v45 }
  0xae   : > { %804 = vmatprep.subr.mxu0 %v1315_v0  ;;  %926 = vmatprep.subr.mxu1 %v1315_v0 }
  0xaf   : > { %808 = vmatpush1.msra.mxu0 %v2080_v28  ;;  %928 = vmatpush1.msra.mxu1 %v1444_v5  ;;  %v2083_v5 = vand.u32 4294901760, %v1533_v50 }
  0xb0   : > { %809 = vmatprep.subr.mxu0 %v1315_v0  ;;  %929 = vmatprep.subr.mxu1 %v1315_v0 }
  0xb1   : > { %813 = vmatpush1.msra.mxu0 %v2081_v21  ;;  %931 = vmatpush1.msra.mxu1 %v1446_v6  ;;  %v2084_v6 = vand.u32 4294901760, %v1546_v56 }
  0xb2   : > { %814 = vmatprep.subr.mxu0 %v1315_v0  ;;  %932 = vmatprep.subr.mxu1 %v1315_v0 }
  0xb3   : > { %818 = vmatpush1.msra.mxu0 %v2082_v4  ;;  %934 = vmatpush1.msra.mxu1 %v1451_v11  ;;  %v2085_v11 = vand.u32 4294901760, %v1558_v61 }
  0xb4   : > { %819 = vmatprep.subr.mxu0 %v1315_v0  ;;  %935 = vmatprep.subr.mxu1 %v1315_v0 }
  0xb5   : > { %823 = vmatpush1.msra.mxu0 %v2083_v5  ;;  %937 = vmatpush1.msra.mxu1 %v1453_v12  ;;  %v2086_v12 = vand.u32 4294901760, %v1572_v8 }
  0xb6   : > { %824 = vmatprep.subr.mxu0 %v1315_v0  ;;  %938 = vmatprep.subr.mxu1 %v1315_v0 }
  0xb7   : > { %828 = vmatpush1.msra.mxu0 %v2084_v6  ;;  %940 = vmatpush1.msra.mxu1 %v1455_v13  ;;  %v2087_v13 = vand.u32 4294901760, %v1577_v9 }
  0xb8   : > { %829 = vmatprep.subr.mxu0 %v1315_v0  ;;  %941 = vmatprep.subr.mxu1 %v1315_v0 }
  0xb9   : > { %833 = vmatpush1.msra.mxu0 %v2085_v11  ;;  %943 = vmatpush1.msra.mxu1 %v1466_v18  ;;  %v2088_v18 = vand.u32 4294901760, %v1598_v39 }
  0xba   : > { %834 = vmatprep.subr.mxu0 %v1315_v0  ;;  %944 = vmatprep.subr.mxu1 %v1315_v0 }
  0xbb   : > { %838 = vmatpush1.msra.mxu0 %v2086_v12  ;;  %946 = vmatpush1.msra.mxu1 %v1483_v26  ;;  %v2091_v26 = vand.u32 4294901760, %v1640_v7 }
  0xbc   : > { %839 = vmatprep.subr.mxu0 %v1315_v0  ;;  %947 = vmatprep.subr.mxu1 %v1315_v0 }
  0xbd   : > { %843 = vmatpush1.msra.mxu0 %v2087_v13  ;;  %949 = vmatpush1.msra.mxu1 %v1488_v29  ;;  %v2092_v29 = vand.u32 4294901760, %v1654_v55 }
  0xbe   : > { %844 = vmatprep.subr.mxu0 %v1315_v0  ;;  %950 = vmatprep.subr.mxu1 %v1315_v0 }
  0xbf   : > { %848 = vmatpush1.msra.mxu0 %v2088_v18  ;;  %952 = vmatpush1.msra.mxu1 %v1509_v37  ;;  %v2095_v37 = vand.u32 4294901760, %v1707_v3  ;;  %v254_v41 = vpop.permute.xlu0 %253 }
  0xc0   : > { %849 = vmatprep.subr.mxu0 %v1315_v0  ;;  %953 = vmatprep.subr.mxu1 %v1315_v0 }
  0xc1   : > { %853 = vmatpush1.msra.mxu0 %v2089_v22  ;;  %955 = vmatpush1.msra.mxu1 %v1521_v44  ;;  %v2096_v44 = vand.u32 4294901760, %v1720_v46 }
  0xc2   : > { %854 = vmatprep.subr.mxu0 %v1315_v0  ;;  %956 = vmatprep.subr.mxu1 %v1315_v0 }
  0xc3   : > { %858 = vmatpush1.msra.mxu0 %v2090_v25  ;;  %958 = vmatpush1.msra.mxu1 %v1537_v51 }
  0xc4   : > { %875 = vmatprep.subr.mxu0 %v1315_v0  ;;  %959 = vmatprep.subr.mxu1 %v1315_v0 }
  0xc5   : > { %879 = vmatpush2.msra.mxu0 %v2091_v26  ;;  %961 = vmatpush1.msra.mxu1 %v1550_v57 }
  0xc6   : > { %880 = vmatprep.subr.mxu0 %v1315_v0  ;;  %962 = vmatprep.subr.mxu1 %v1315_v0 }
  0xc7   : > { %884 = vmatpush2.msra.mxu0 %v2092_v29  ;;  %964 = vmatpush1.msra.mxu1 %v1562_v62 }
  0xc8   : > { %885 = vmatprep.subr.mxu0 %v1315_v0  ;;  %965 = vmatprep.subr.mxu1 %v1315_v0 }
  0xc9   : > { %889 = vmatpush2.msra.mxu0 %v2093_v31  ;;  %967 = vmatpush1.msra.mxu1 %v1583_v15 }
  0xca   : > { %890 = vmatprep.subr.mxu0 %v1315_v0  ;;  %968 = vmatprep.subr.mxu1 %v1315_v0 }
  0xcb   : > { %894 = vmatpush2.msra.mxu0 %v2094_v36  ;;  %970 = vmatpush1.msra.mxu1 %v1588_v27 }
  0xcc   : > { %895 = vmatprep.subr.mxu0 %v1315_v0  ;;  %987 = vmatprep.subr.mxu1 %v1315_v0 }
  0xcd   : > { %899 = vmatpush2.msra.mxu0 %v2095_v37  ;;  %989 = vmatpush2.msra.mxu1 %v1609_v47 }
  0xce   : > { %900 = vmatprep.subr.mxu0 %v1315_v0  ;;  %990 = vmatprep.subr.mxu1 %v1315_v0 }
  0xcf   : > { %904 = vmatpush2.msra.mxu0 %v2096_v44  ;;  %992 = vmatpush2.msra.mxu1 %v1617_v53 }
  0xd0   : > { %905 = vmatprep.subr.mxu0 %v1315_v0  ;;  %993 = vmatprep.subr.mxu1 %v1315_v0 }
  0xd1   : > { %909 = vmatpush2.msra.mxu0 %v538_v40  ;;  %995 = vmatpush2.msra.mxu1 %v1635_v14 }
  0xd2   : > { %910 = vmatprep.subr.mxu0 %v1315_v0  ;;  %996 = vmatprep.subr.mxu1 %v1315_v0 }
  0xd3   : > { %914 = vmatpush2.msra.mxu0 %v545_v10  ;;  %916 = vmatprep.mubr.f32.mxu0 %v1658_v60 }
  0xd4   : > { %998 = vmatpush2.msra.mxu1 %v2071_v32  ;;  %918 = vmatmul.mubr.f32.vlgmr.msra.gmra.mxu0 %v1670_v54 }
  0xd5   : > { %999 = vmatprep.subr.mxu1 %v1315_v0  ;;  %1012 = vmatprep.mubr.f32.mxu1 %v1658_v60 }
  0xd6   : > { %1001 = vmatpush2.msra.mxu1 %v2072_v34 }
  0xd7   : > { %1002 = vmatprep.subr.mxu1 %v1315_v0 }
  0xd8   : > { %1004 = vmatpush2.msra.mxu1 %v1687_v30 }
  0xd9   : > { %1005 = vmatprep.subr.mxu1 %v1315_v0 }
  0xda   : > { %1007 = vmatpush2.msra.mxu1 %v1704_v35 }
  0xdb   : > { %1008 = vmatprep.subr.mxu1 %v1315_v0 }
  0xdc   : > { %1010 = vmatpush2.msra.mxu1 %v1716_v24 }
  0xdd   : > { %1014 = vmatmul.mubr.f32.vlgmr.msra.gmra.mxu1 %v1670_v54 }
 0x131   : > { %v361_v23 = vpop.f32.mrf.mxu0 }
 0x132   : > { %v362_v50 = vadd.f32 %v361_v23, %v254_v41 }
 0x133   : > { %v363_v45 = vpop.f32.mrf.mxu0 }
 0x139   : > { %v553_v51 = vpop.f32.mrf.mxu1 }
 0x13a   : > { %v554_v56 = vadd.f32 %v553_v51, %v362_v50 }
 0x13b   : > { %v555_v57 = vpop.f32.mrf.mxu1 }
 0x162   : > { %v675_v30 = vpop.f32.mrf.mxu0 }
 0x163   : > { %v676_v0 = vadd.f32 %v675_v30, %v554_v56 }
 0x164   : > { %v677_v60 = vpop.f32.mrf.mxu0 }
 0x16b   : > { %v775_v61 = vpop.f32.mrf.mxu1 }
 0x16c   : > { %v776_v24 = vadd.f32 %v775_v61, %v676_v0 }
 0x16d   : > { %v777_v62 = vpop.f32.mrf.mxu1 }
 0x194   : > { %v919_v8 = vpop.f32.mrf.mxu0 }
 0x195   : > { %v920_v15 = vadd.f32 %v919_v8, %v776_v24 }
 0x196   : > { %v921_v9 = vpop.f32.mrf.mxu0 }
 0x19d   : > { %v1015_v54 = vpop.f32.mrf.mxu1 }
 0x19e   : > { %v1016_v27 = vadd.f32 %v1015_v54, %v920_v15 }
 0x19f   : > { %v1017_v39 = vpop.f32.mrf.mxu1 }
 0x1a0   : > { %1019 = vst [vmem:[%s224_s8] sm:$0x7] %v1016_v27 }
 0x1a1 PF: > { %s17_s17 = sadd.s32 1, %s1309_s17   ;;  %s2097_s12 = smov %s1293_s13 }
 0x1a2   : > { %p14_p12 = scmp.ge.s32.totalorder %s17_s17, 4   ;;  %s2098_s13 = smov %s1297_s14 }
 0x1a3   : > { %s2099_s14 = smov %s1422_s4  ;;  %s2100_s15 = smov %s1305_s16 }
 0x1a4   : > { %s2101_s16 = smov %s2103_s30  ;;  %16 = sbr.rel (!%p14_p12) target bundleno = 5 (0x5), region = 76 }
 0x1a9   :  { %1045 = vsyncpa [#allocation3], 1 }
 0x1aa   :  { %1047 = vsyncpa [#allocation3 + $0x1], 1 }
 0x1ab   :  { %1048 = vsyncpa [#allocation5], 1 }

</bundles_post_ra>
